<compile_context>
chip_gen: v7x
topology: tpu7x:2x2x1
jax: 0.10.0
libtpu: 0.0.40
codegen_flags: <defaults>
</compile_context>

<pallas_src>
import functools

import jax
import jax.numpy as jnp
from jax.experimental import pallas as pl
from jax.experimental.pallas import tpu as pltpu


def _dtype_min(dtype):
    """Identity element for max in this dtype (NEVER zero)."""
    dtype = jnp.dtype(dtype)
    if jnp.issubdtype(dtype, jnp.floating):
        return jnp.asarray(-jnp.inf, dtype)
    if jnp.issubdtype(dtype, jnp.integer):
        return jnp.asarray(jnp.iinfo(dtype).min, dtype)
    if dtype == jnp.bool_:
        return jnp.asarray(False, dtype)
    raise TypeError(f"unsupported dtype for max pooling: {dtype}")


def _pick_channel_block(channels):
    """Lane-dense channel block: multiple of 128, or the full axis."""
    if channels <= 512:
        return channels
    for cand in (512, 384, 256, 128):
        if channels % cand == 0:
            return cand
    return channels  # full axis is always layout-legal


def _pick_seq_block(seq_len, block_c, itemsize):
    """L block: prefer 512-1024 rows, cap tile at ~4 MiB/buffer, keep it a
    multiple of 128 (legal on both the sublane and lane axis) unless it is the
    full axis.  Non-dividing blocks get their ragged tail masked in-kernel."""
    cap = max(128, (4 * 2**20) // max(1, block_c * itemsize))
    if seq_len <= min(1024, cap):
        return seq_len
    for cand in (1024, 512, 256, 128):
        if cand <= cap and seq_len % cand == 0:
            return cand
    for cand in (1024, 512, 256, 128):
        if cand <= cap:
            return cand  # ragged tail handled by in-kernel masking
    return 128


def _gmp1d_channels_last_kernel(x_ref, o_ref, *, seq_len, block_l):
    # x_ref: (1, block_l, block_c)  -- L on sublanes, C on lanes
    # o_ref: (1, 1, block_c)        -- VMEM-resident accumulator across L axis
    l = pl.program_id(2)
    x = x_ref[...]
    neg = _dtype_min(x.dtype)
    if seq_len % block_l != 0:  # static: only emit tail masking when needed
        idx = l * block_l + jax.lax.broadcasted_iota(jnp.int32, x.shape, 1)
        x = jnp.where(idx < seq_len, x, neg)
    partial = jnp.max(x, axis=1, keepdims=True)  # (1, 1, block_c)

    @pl.when(l == 0)
    def _init():
        o_ref[...] = jnp.full(o_ref.shape, neg, o_ref.dtype)

    o_ref[...] = jnp.maximum(o_ref[...], partial)


def _gmp1d_channels_first_kernel(x_ref, o_ref, *, seq_len, block_l):
    # x_ref: (1, block_c, block_l)  -- C on sublanes, L on lanes
    # o_ref: (1, 1, block_c)
    l = pl.program_id(2)
    x = x_ref[...]
    neg = _dtype_min(x.dtype)
    if seq_len % block_l != 0:
        idx = l * block_l + jax.lax.broadcasted_iota(jnp.int32, x.shape, 2)
        x = jnp.where(idx < seq_len, x, neg)
    partial = jnp.max(x, axis=2)[:, None, :]  # lane reduce (XLU), (1, 1, block_c)

    @pl.when(l == 0)
    def _init():
        o_ref[...] = jnp.full(o_ref.shape, neg, o_ref.dtype)

    o_ref[...] = jnp.maximum(o_ref[...], partial)


def global_max_pooling_1d(x, data_format="channels_last", *, block_l=None, block_c=None):
    """Pallas TPU equivalent of GlobalMaxPooling1D.forward. Returns (N, C)."""
    if x.ndim != 3:
        raise ValueError(f"expected rank-3 input, got shape {x.shape}")
    if data_format == "channels_last":
        n, seq_len, channels = x.shape
    elif data_format == "channels_first":
        n, channels, seq_len = x.shape
    else:
        raise ValueError(f"unknown data_format: {data_format}")

    itemsize = jnp.dtype(x.dtype).itemsize
    if block_c is None:
        block_c = _pick_channel_block(channels)
    block_c = min(block_c, channels)
    if block_l is None:
        block_l = _pick_seq_block(seq_len, block_c, itemsize)
    block_l = min(block_l, seq_len)

    grid = (n, pl.cdiv(channels, block_c), pl.cdiv(seq_len, block_l))

    if data_format == "channels_last":
        kernel = functools.partial(
            _gmp1d_channels_last_kernel, seq_len=seq_len, block_l=block_l)
        in_spec = pl.BlockSpec((1, block_l, block_c), lambda nn, cc, ll: (nn, ll, cc))
    else:
        # No wrapper-side transpose for channels_first: reduce the lane axis.
        kernel = functools.partial(
            _gmp1d_channels_first_kernel, seq_len=seq_len, block_l=block_l)
        in_spec = pl.BlockSpec((1, block_c, block_l), lambda nn, cc, ll: (nn, cc, ll))

    # Output presented as (N, 1, C): lane axis = C (lane-dense stores) and the
    # index_map ignores the L grid index, so this block is the resident
    # accumulator across the "arbitrary" L axis.
    out_spec = pl.BlockSpec((1, 1, block_c), lambda nn, cc, ll: (nn, 0, cc))

    in_block_bytes = block_l * block_c * itemsize
    # Explicit VMEM budget: >= v5e's tiny 16 MiB scoped default, <= v7x's
    # 64 MiB physical VMEM; our double-buffered tiles use far less.
    vmem_limit = int(min(64 * 2**20, max(32 * 2**20, 8 * in_block_bytes)))

    out3 = pl.pallas_call(
        kernel,
        out_shape=jax.ShapeDtypeStruct((n, 1, channels), x.dtype),
        grid_spec=pltpu.PrefetchScalarGridSpec(
            num_scalar_prefetch=0,
            grid=grid,
            in_specs=[in_spec],
            out_specs=out_spec,
        ),
        compiler_params=pltpu.CompilerParams(
            dimension_semantics=("parallel", "parallel", "arbitrary"),
            vmem_limit_bytes=vmem_limit,
        ),
    )(x)
    return out3.reshape(n, channels)


if __name__ == "__main__":
    key = jax.random.PRNGKey(0)
    k1, k2, k3, k4 = jax.random.split(key, 4)

    # channels_last: (N, L, C) -> (N, C)
    x_last = jax.random.normal(k1, (2, 16, 4), dtype=jnp.float32)
    out_last = jax.block_until_ready(global_max_pooling_1d(x_last, "channels_last"))
    assert out_last.shape == (2, 4)
    assert jnp.array_equal(out_last, jnp.max(x_last, axis=1)), "channels_last mismatch"

    # channels_first: (N, C, L) -> (N, C) without any wrapper transpose
    x_first = jax.random.normal(k2, (2, 4, 16), dtype=jnp.float32)
    out_first = jax.block_until_ready(global_max_pooling_1d(x_first, "channels_first"))
    assert out_first.shape == (2, 4)
    assert jnp.array_equal(out_first, jnp.max(x_first, axis=2)), "channels_first mismatch"

    # Multi-L-block path with a ragged tail, all-negative bf16 input:
    # exercises the resident accumulator, -inf init, tail masking, and the
    # dtype-preserving (no f32 upcast) path.
    x_rag = -jnp.abs(jax.random.normal(k3, (2, 40, 8), dtype=jnp.bfloat16)) - 1.0
    out_rag = jax.block_until_ready(
        global_max_pooling_1d(x_rag, "channels_last", block_l=16))
    assert jnp.array_equal(out_rag, jnp.max(x_rag, axis=1)), "ragged channels_last mismatch"

    # channels_first with a ragged lane-axis tail (block_l multiple of 128).
    x_rag_f = -jnp.abs(jax.random.normal(k4, (2, 8, 200), dtype=jnp.float32)) - 1.0
    out_rag_f = jax.block_until_ready(
        global_max_pooling_1d(x_rag_f, "channels_first", block_l=128))
    assert jnp.array_equal(out_rag_f, jnp.max(x_rag_f, axis=2)), "ragged channels_first mismatch"

    print("KERNEL_OK")
</pallas_src>

<mosaic_0001>
module attributes {stable_mosaic.version = 11 : i64} {
  func.func @_gmp1d_channels_last_kernel(%arg0: i32, %arg1: i32, %arg2: i32, %arg3: memref<1x16x4xf32, #tpu.memory_space<vmem>>, %arg4: memref<1x1x4xf32, #tpu.memory_space<vmem>>) attributes {dimension_semantics = [#tpu.dimension_semantics<parallel>, #tpu.dimension_semantics<parallel>, #tpu.dimension_semantics<arbitrary>], iteration_bounds = array<i64: 2, 1, 1>, scalar_prefetch = 0 : i64, scratch_operands = 0 : i64, tpu.core_type = #tpu.core_type<tc>, window_params = [{transform_indices = @transform_0, window_bounds = array<i64: 1, 16, 4>}, {transform_indices = @transform_1, window_bounds = array<i64: 1, 1, 4>}]} {
    %c0 = arith.constant 0 : index
    %c0_0 = arith.constant 0 : index
    %c0_1 = arith.constant 0 : index
    %0 = vector.load %arg3[%c0, %c0_0, %c0_1] : memref<1x16x4xf32, #tpu.memory_space<vmem>>, vector<1x16x4xf32>
    %cst = arith.constant dense<0xFF800000> : vector<1x4xf32>
    %1 = vector.multi_reduction <maximumf>, %0, %cst [1] : vector<1x16x4xf32> to vector<1x4xf32>
    %2 = vector.shape_cast %1 : vector<1x4xf32> to vector<1x1x4xf32>
    %c0_i32 = arith.constant 0 : i32
    %3 = arith.cmpi eq, %arg2, %c0_i32 : i32
    %4 = arith.extui %3 : i1 to i32
    %cst_2 = arith.constant 0xFF800000 : f32
    %c0_i32_3 = arith.constant 0 : i32
    %5 = arith.cmpi ne, %4, %c0_i32_3 : i32
    scf.if %5 {
      %9 = vector.broadcast %cst_2 : f32 to vector<1x1x4xf32>
      %c0_10 = arith.constant 0 : index
      %c0_11 = arith.constant 0 : index
      %c0_12 = arith.constant 0 : index
      %10 = vector.load %arg4[%c0_10, %c0_11, %c0_12] : memref<1x1x4xf32, #tpu.memory_space<vmem>>, vector<1x1x4xf32>
      tpu.vector_store %arg4[%c0_10, %c0_11, %c0_12], %9 {strides = array<i32>} : memref<1x1x4xf32, #tpu.memory_space<vmem>>, vector<1x1x4xf32>,
    } else {
    }
    %c0_4 = arith.constant 0 : index
    %c0_5 = arith.constant 0 : index
    %c0_6 = arith.constant 0 : index
    %6 = vector.load %arg4[%c0_4, %c0_5, %c0_6] : memref<1x1x4xf32, #tpu.memory_space<vmem>>, vector<1x1x4xf32>
    %7 = arith.maximumf %6, %2 : vector<1x1x4xf32>
    %c0_7 = arith.constant 0 : index
    %c0_8 = arith.constant 0 : index
    %c0_9 = arith.constant 0 : index
    %8 = vector.load %arg4[%c0_7, %c0_8, %c0_9] : memref<1x1x4xf32, #tpu.memory_space<vmem>>, vector<1x1x4xf32>
    tpu.vector_store %arg4[%c0_7, %c0_8, %c0_9], %7 {strides = array<i32>} : memref<1x1x4xf32, #tpu.memory_space<vmem>>, vector<1x1x4xf32>,
    return
  }
  func.func @transform_0(%arg0: i32, %arg1: i32, %arg2: i32) -> (i32, i32, i32) {
    %c0_i32 = arith.constant 0 : i32
    return %arg0, %arg2, %arg1 : i32, i32, i32
  }
  func.func @transform_1(%arg0: i32, %arg1: i32, %arg2: i32) -> (i32, i32, i32) {
    %c0_i32 = arith.constant 0 : i32
    %c0_i32_0 = arith.constant 0 : i32
    return %arg0, %c0_i32, %arg1 : i32, i32, i32
  }
}

</mosaic_0001>

<bundles_post_ra>
// kernel: tpu_custom_call.1
= control target key start
LH: loop header
LB: loop body
LE: loop exit
PB: predicated region body
PF: predicated region fallthrough
CT: control target
= control target key end

     0   :  { %6 = vsyncpa [#allocation3], 0  ;;  %s547_s0 = inlined_call_operand.vmem [shape: f32[2,16,4], index: 0, kind: input, shape index: {}]   ;;  %s548_s1 = inlined_call_operand.hbm [shape: f32[2,1,4], index: 1, kind: output, shape index: {}]  }
   0x1   :  { %8 = vsyncpa [#allocation3 + $0x1], 0  ;;  %s433_s6 = smov 0   ;;  %s435_s7 = smov 0  }
   0x2   :  { %s437_s8 = smov 0   ;;  %s439_s9 = smov 0  }
   0x3   :  { %s441_s10 = smov 0   ;;  %s443_s11 = smov 0  }
   0x4 LB: > { %s274_s12 = sadd.s32 4294967295, %s419_s11   ;;  %s275_s13 = sadd.s32 4294967294, %s419_s11   ;;  %s419_s11 = sphi %s443_s11, %s14_s11   ;;  %s415_s10 = sphi %s441_s10, %s555_s10   ;;  %s411_s9 = sphi %s439_s9, %s554_s9   ;;  %s407_s8 = sphi %s437_s8, %s553_s8   ;;  %s403_s7 = sphi %s435_s7, %s552_s7   ;;  %s399_s6 = sphi %s433_s6, %s551_s6  }
   0x5   : > { %s33_s14 = sadd.s32 1, %s415_s10  ;;  %s72_s15 = sadd.s32 1, %s407_s8 }
   0x6   : > { %p35_p0 = scmp.ge.s32.totalorder %s33_s14, 2  ;;  %p82_p1 = scmp.ne.s32.totalorder %s407_s8, %s403_s7 }
   0x7   : > { %p83_p2 = scmp.eq.s32.totalorder %s274_s12, 1  ;;  %p88_p3 = scmp.ne.s32.totalorder %s403_s7, %s399_s6 }
   0x8   : > { %s557_s14 = smov (%p35_p0, %s33_s14), 0  ;;  %p89_p5 = scmp.eq.s32.totalorder %s275_s13, 1 }
   0x9   : > { %p473_p4 = por %p83_p2, %p82_p1  ;;  %s67_s17 = ssub.s32 %s415_s10, %s557_s14 }
   0xa   : > { %p278_p6 = scmp.ge.s32.totalorder %s419_s11, 1  ;;  %p70_p7 = scmp.eq.s32.totalorder %s67_s17, 0 }
   0xb   : > { %p480_p8 = por %p89_p5, %p88_p3  ;;  %p123_p9 = scmp.lt.s32.totalorder %s419_s11, 3 }
   0xc   : > { %s486_s19 = scalar_select %p70_p7, %s407_s8, %s72_s15  }
   0xd   : > { %p124_p10 = pnand %p278_p6, %p123_p9 }
   0xe   : > { %s147_s20 = sand.u32 (!%p124_p10), 1, %s403_s7   ;;  %vm178_vm0 = vcmask (!%p124_p10), 24576   ;;  %p150_p11 = scmp.lt.s32.totalorder (!%p124_p10), %s411_s9, 1  ;;  %v421_v0 = vmov (!%p124_p10), -inf   ;;  %vm164_vm1 = vcmask (!%p124_p10), 31744  }
   0xf   : > { %127 = sbr.rel (%p124_p10) target bundleno = 58 (0x3a), region = 24  ;;  %s148_s21 = scalar_lea.vmem (!%p124_p10), [#allocation2], %s147_s20 }
  0x10   : > { %179 = vst.msk [vmem:[%s148_s21] sm:$0x1] (!%p124_p10), %vm178_vm0, %v421_v0  ;;  %s281_s27 = sshll.u32 (!%p124_p10), %s411_s9, 4  ;;  %s198_s28 = sshll.u32 (!%p124_p10), %s148_s21, 4  ;;  %s501_s28 = int_to_ptr.vmem [resolvable:$true] %s198_s28 }
  0x11   : > { %s499_s2 = scalar_lea.hbm (!%p124_p10), %s548_s1, %s281_s27  ;;  %s185_s3 = scalar_lea.sflag (!%p124_p10), [#allocation3], %s147_s20 }
  0x12   : > { %s341_s4 = scalar_lea.vmem (!%p124_p10), %s501_s28, 16  ;;  %s422_s5 = smov (!%p124_p10), [#allocation2]  }
  0x13   : > { %p342_p12 = scmp.ne.s32.totalorder (!%p124_p10), %s501_s28, %s341_s4 }
  0x15   : > { %p343_p13 = pnand (!%p124_p10), %p342_p12, %p473_p4 }
  0x16   : > { %s151_s22 = scalar_select %p150_p11, %s411_s9, 1 }
  0x17   : > { %v180_v11 = vld [vmem:[%s148_s21] sm:$0x1]  ;;  %p344_p0 = pneg %p343_p13  ;;  %s345_s9 = sshll.u32 %s422_s5, 4  ;;  %s346_s9 = int_to_ptr.vmem [resolvable:$false] %s345_s9 }
  0x18   : > { %s284_s23 = sshll.u32 %s151_s22, 4  ;;  %s347_s12 = scalar_lea.vmem %s346_s9, 32 }
  0x19   : > { %s160_s26 = scalar_lea.vmem %s547_s0, %s284_s23  ;;  %p348_p1 = scmp.lt.s32.totalorder %s501_s28, %s346_s9 }
  0x1a   : > { %v162_v1 = vld [vmem:[%s160_s26] sm:$0xff]  ;;  %v163_v2 = vld [vmem:[%s160_s26 + $0x8] sm:$0xff]  ;;  %p349_p2 = scmp.lt.s32.totalorder %s347_s12, %s341_s4 }
  0x1b   : > { %v165_v3 = vsel %vm164_vm1, %v162_v1, -inf  ;;  %v166_v4 = vsel %vm164_vm1, %v163_v2, -inf }
  0x1c   : > { %v167_v5 = vmax.f32 %v165_v3, %v166_v4  ;;  %p350_p3 = por %p349_p2, %p348_p1 }
  0x1e   : > { %v168_v6 = vrot.slane %v167_v5, 4  ;;  %p351_p5 = pnand %p350_p3, %p344_p0 }
  0x20   : > { %v169_v7 = vmax.f32 %v167_v5, %v168_v6 }
  0x22   : > { %v170_v8 = vrot.slane %v169_v7, 2 }
  0x24   : > { %v171_v9 = vmax.f32 %v169_v7, %v170_v8 }
  0x26   : > { %v172_v10 = vrot.slane %v171_v9, 1 }
  0x28   : > { %v173_v12 = vmax.f32 %v171_v9, %v172_v10 }
  0x2a   : > { %v181_v13 = vmax.f32 %v180_v11, %v173_v12 }
  0x2c   : > { %183 = vst.msk [vmem:[%s148_s21] sm:$0x1] %vm178_vm0, %v181_v13 }
  0x2d   : > { %354 = shalt.err (!%p351_p5)
}
  0x2e   : > { %s355_s13 = scalar_lea.hbm %s499_s2, 16  ;;  %s359_s20 = scalar_lea.hbm %s548_s1, 32 }
  0x2f   : > { %p356_p6 = scmp.ne.s32.totalorder %s499_s2, %s355_s13  ;;  %p360_p10 = scmp.lt.u32.totalorder %s499_s2, %s548_s1 }
  0x30   : > { %p361_p11 = scmp.lt.u32.totalorder %s359_s20, %s355_s13  ;;  %p363_p13 = scmp.lt.u32.totalorder %s355_s13, %s499_s2 }
  0x31   : > { %p357_p7 = pnand %p356_p6, %p473_p4 }
  0x32   : > { %p362_p12 = por %p361_p11, %p360_p10 }
  0x33   : > { %p358_p9 = pneg %p357_p7 }
  0x34   : > { %p364_p0 = por %p363_p13, %p362_p12 }
  0x36   : > { %p365_p1 = pnand %p364_p0, %p358_p9 }
  0x38   : > { %368 = shalt.err (!%p365_p1)
}
  0x39   : > { %285 = dma.vmem_to_hbm [thread:$0]  (%p473_p4), %s501_s28, 16, %s499_s2, %s185_s3  }
  0x3a PF: > { %p291_p2 = scmp.ge.s32.totalorder %s419_s11, 2  ;;  %s210_s23 = sand.u32 1, %s399_s6  }
  0x3b   : > { %s211_s24 = scalar_lea.sflag [#allocation3], %s210_s23 }
  0x3c   : > { %p288_p3 = pnand %p291_p2, %p480_p8 }
  0x3e   : > { %394 = dma.done.wait (!%p288_p3), %s211_s24, 16  }
  0x3f   : > { %396 = vsyncadd (!%p288_p3), %s211_s24, 4294967280  ;;  %s14_s11 = sadd.s32 1, %s419_s11   ;;  %s551_s6 = smov %s403_s7 }
  0x40   : > { %p11_p5 = scmp.ge.s32.totalorder %s14_s11, 4   ;;  %s552_s7 = smov %s407_s8 }
  0x41   : > { %s553_s8 = smov %s486_s19  ;;  %s554_s9 = smov %s415_s10 }
  0x42   : > { %s555_s10 = smov %s557_s14  ;;  %13 = sbr.rel (!%p11_p5) target bundleno = 4 (0x4), region = 63 }
  0x49   :  { %215 = vsyncpa [#allocation3], 1 }
  0x4a   :  { %217 = vsyncpa [#allocation3 + $0x1], 1 }

</bundles_post_ra>
